<compile_context>
chip_gen: v6e
topology: v6e:2x2x1
jax: 0.10.0
libtpu: 0.0.40
codegen_flags: <defaults>
</compile_context>

<pallas_src>
import functools

import jax
import jax.numpy as jnp
from jax.experimental import pallas as pl
from jax.experimental.pallas import tpu as pltpu

_TB_MAX = 1024  # max batch-tile; keeps >=2 tiles for B>=2048 (v7x 2-TC sharding)


def _round_up(x, m):
    return ((x + m - 1) // m) * m


def _cdiv(a, b):
    return -(-a // b)


def _fused_critic_kernel(*refs, alpha, n_hidden):
    """One batch tile through the whole MLP.

    refs = (obs, act,
            w0_obs, w0_act, b0,
            [w_i, b_i] for each extra hidden layer,
            w_last_row (1, H), b_last (1, 1),
            out (1, TB))
    """
    obs = refs[0][...]
    act = refs[1][...]
    out_ref = refs[-1]
    p = refs[2:-1]

    # Layer 0: folded concat -> split matmul on the MXU.
    h = jnp.dot(obs, p[0][...], preferred_element_type=jnp.float32)
    h = h + jnp.dot(act, p[1][...], preferred_element_type=jnp.float32)
    h = h + p[2][...]
    h = jnp.maximum(h, alpha * h)  # LeakyReLU(0.05), 0 < alpha < 1

    idx = 3
    for _ in range(n_hidden - 1):
        w = p[idx][...]
        b = p[idx + 1][...]
        idx += 2
        h = jnp.dot(h, w, preferred_element_type=jnp.float32) + b
        h = jnp.maximum(h, alpha * h)

    # Final width-1 layer: broadcast-multiply + lane reduce (XLU), stored as
    # one lane-dense (1, TB) row -> unmasked vst, ~128x less HBM writeback.
    w_row = p[idx][...]       # (1, H)
    b_last = p[idx + 1][...]  # (1, 1)
    y = jnp.sum(h * w_row, axis=-1)                       # (TB,)
    out_ref[...] = (y[None, :] + b_last).astype(out_ref.dtype)


def init_critic_params(key, obs_dim, act_dim, hidd_dims):
    """Init mimicking PyTorch nn.Linear default (uniform +/- 1/sqrt(fan_in))."""
    dims = [obs_dim + act_dim] + list(hidd_dims) + [1]
    params = []
    for i in range(len(dims) - 1):
        fan_in, fan_out = dims[i], dims[i + 1]
        key, kw, kb = jax.random.split(key, 3)
        bound = 1.0 / (fan_in ** 0.5)
        # store weight as [in, out] so the kernel does x @ W
        w = jax.random.uniform(kw, (fan_in, fan_out), jnp.float32, -bound, bound)
        b = jax.random.uniform(kb, (1, fan_out), jnp.float32, -bound, bound)
        params.append((w, b))
    return params


def _choose_tiling(B):
    """Pick (num_tiles, TB) so padding waste is < one tile and TB <= _TB_MAX."""
    B8 = _round_up(B, 8)
    num_tiles = _cdiv(B8, _TB_MAX)
    if num_tiles == 1:
        TB = B8
    else:
        TB = _round_up(_cdiv(B8, num_tiles), 128)  # lane-aligned output rows
    return num_tiles, TB


def critic_forward(obs, act, params, alpha=0.05):
    """Fused-MLP Critic forward. obs: [B, obs_dim], act: [B, act_dim] -> [B, 1]."""
    B, obs_dim = obs.shape
    act_dim = act.shape[1]
    n_layers = len(params)
    n_hidden = n_layers - 1

    # ---- parameter prep (tiny one-off glue, outside the hot loop) --------
    w0, b0 = params[0]
    w0_obs, w0_act = w0[:obs_dim], w0[obs_dim:]
    w_last, b_last = params[-1]          # (H, 1), (1, 1)
    w_last_row = w_last.reshape(1, -1)   # (1, H) for broadcast-mul + lane reduce

    flat_params = [w0_obs, w0_act, b0]
    for w, b in params[1:-1]:
        flat_params.extend([w, b])
    flat_params.extend([w_last_row, b_last])

    # ---- batch tiling -----------------------------------------------------
    num_tiles, TB = _choose_tiling(B)
    B_pad = num_tiles * TB
    if B_pad != B:
        pad = ((0, B_pad - B), (0, 0))
        obs = jnp.pad(obs, pad)
        act = jnp.pad(act, pad)
    grid = (num_tiles,)

    # Weights/biases: full-array blocks, constant index_map -> VMEM-resident.
    param_specs = [pl.BlockSpec(fp.shape, lambda i: (0, 0)) for fp in flat_params]

    # Scheduling hint for XLA around this (small) custom call.
    macs = sum(int(w.shape[0]) * int(w.shape[1]) for w, _ in params)
    param_elems = sum(int(w.size) + int(b.size) for w, b in params)
    cost = pl.CostEstimate(
        flops=2 * B_pad * macs,
        transcendentals=0,
        bytes_accessed=4 * (B_pad * (obs_dim + act_dim) + param_elems + B_pad),
    )

    kernel = functools.partial(_fused_critic_kernel, alpha=alpha, n_hidden=n_hidden)

    out = pl.pallas_call(
        kernel,
        out_shape=jax.ShapeDtypeStruct((num_tiles, TB), obs.dtype),
        grid=grid,
        in_specs=[
            pl.BlockSpec((TB, obs_dim), lambda i: (i, 0)),
            pl.BlockSpec((TB, act_dim), lambda i: (i, 0)),
            *param_specs,
        ],
        out_specs=pl.BlockSpec((1, TB), lambda i: (i, 0)),
        compiler_params=pltpu.CompilerParams(
            dimension_semantics=("parallel",),  # shards batch tiles on v7x 2-TC
        ),
        cost_estimate=cost,
    )(obs, act, *flat_params)

    return out.reshape(B_pad)[:B, None]


def critic_forward_ref(obs, act, params, alpha=0.05):
    """Pure-JAX reference for verification."""
    x = jnp.concatenate([obs, act], axis=1)
    n_layers = len(params)
    for i, (w, b) in enumerate(params):
        y = x @ w + b
        if i < n_layers - 1:
            y = jnp.where(y >= 0, y, alpha * y)
        x = y
    return x


if __name__ == "__main__":
    batch = 2
    obs_dim = 16
    act_dim = 8
    hidd_dims = [32, 32]

    key = jax.random.PRNGKey(0)
    key, k_obs, k_act, k_params = jax.random.split(key, 4)
    obs = jax.random.normal(k_obs, (batch, obs_dim), jnp.float32)
    act = jax.random.normal(k_act, (batch, act_dim), jnp.float32)
    params = init_critic_params(k_params, obs_dim, act_dim, hidd_dims)

    out = critic_forward(obs, act, params)
    out = jax.block_until_ready(out)

    ref = critic_forward_ref(obs, act, params)
    assert out.shape == (batch, 1), out.shape
    assert jnp.allclose(out, ref, atol=1e-5, rtol=1e-5), (out, ref)

    print("KERNEL_OK")
</pallas_src>

<mosaic_0001>
module attributes {stable_mosaic.version = 11 : i64} {
  func.func @_fused_critic_kernel(%arg0: i32, %arg1: memref<8x16xf32, #tpu.memory_space<vmem>>, %arg2: memref<8x8xf32, #tpu.memory_space<vmem>>, %arg3: memref<16x32xf32, #tpu.memory_space<vmem>>, %arg4: memref<8x32xf32, #tpu.memory_space<vmem>>, %arg5: memref<1x32xf32, #tpu.memory_space<vmem>>, %arg6: memref<32x32xf32, #tpu.memory_space<vmem>>, %arg7: memref<1x32xf32, #tpu.memory_space<vmem>>, %arg8: memref<1x32xf32, #tpu.memory_space<vmem>>, %arg9: memref<1x1xf32, #tpu.memory_space<vmem>>, %arg10: memref<1x8xf32, #tpu.memory_space<vmem>>) attributes {dimension_semantics = [#tpu.dimension_semantics<parallel>], iteration_bounds = array<i64: 1>, scalar_prefetch = 0 : i64, scratch_operands = 0 : i64, tpu.core_type = #tpu.core_type<tc>, window_params = [{transform_indices = @transform_0, window_bounds = array<i64: 8, 16>}, {transform_indices = @transform_1, window_bounds = array<i64: 8, 8>}, {pipeline_mode = #tpu.pipeline_mode<synchronous>, transform_indices = @transform_2, window_bounds = array<i64: 16, 32>}, {pipeline_mode = #tpu.pipeline_mode<synchronous>, transform_indices = @transform_3, window_bounds = array<i64: 8, 32>}, {pipeline_mode = #tpu.pipeline_mode<synchronous>, transform_indices = @transform_4, window_bounds = array<i64: 1, 32>}, {pipeline_mode = #tpu.pipeline_mode<synchronous>, transform_indices = @transform_5, window_bounds = array<i64: 32, 32>}, {pipeline_mode = #tpu.pipeline_mode<synchronous>, transform_indices = @transform_6, window_bounds = array<i64: 1, 32>}, {pipeline_mode = #tpu.pipeline_mode<synchronous>, transform_indices = @transform_7, window_bounds = array<i64: 1, 32>}, {pipeline_mode = #tpu.pipeline_mode<synchronous>, transform_indices = @transform_8, window_bounds = array<i64: 1, 1>}, {transform_indices = @transform_9, window_bounds = array<i64: 1, 8>}]} {
    %c0 = arith.constant 0 : index
    %c0_0 = arith.constant 0 : index
    %0 = vector.load %arg1[%c0, %c0_0] : memref<8x16xf32, #tpu.memory_space<vmem>>, vector<8x16xf32>
    %c0_1 = arith.constant 0 : index
    %c0_2 = arith.constant 0 : index
    %1 = vector.load %arg2[%c0_1, %c0_2] : memref<8x8xf32, #tpu.memory_space<vmem>>, vector<8x8xf32>
    %c0_3 = arith.constant 0 : index
    %c0_4 = arith.constant 0 : index
    %2 = vector.load %arg3[%c0_3, %c0_4] : memref<16x32xf32, #tpu.memory_space<vmem>>, vector<16x32xf32>
    %cst = arith.constant dense<0.000000e+00> : vector<8x32xf32>
    %3 = tpu.matmul %0, %2, %cst {dimension_numbers = #tpu.dot_dimension_numbers<[1], [0], [0], [1], [0, 0, 1, 1], [], []>} : vector<8x16xf32>, vector<16x32xf32>, vector<8x32xf32> -> vector<8x32xf32>
    %c0_5 = arith.constant 0 : index
    %c0_6 = arith.constant 0 : index
    %4 = vector.load %arg4[%c0_5, %c0_6] : memref<8x32xf32, #tpu.memory_space<vmem>>, vector<8x32xf32>
    %cst_7 = arith.constant dense<0.000000e+00> : vector<8x32xf32>
    %5 = tpu.matmul %1, %4, %cst_7 {dimension_numbers = #tpu.dot_dimension_numbers<[1], [0], [0], [1], [0, 0, 1, 1], [], []>} : vector<8x8xf32>, vector<8x32xf32>, vector<8x32xf32> -> vector<8x32xf32>
    %6 = arith.addf %3, %5 : vector<8x32xf32>
    %c0_8 = arith.constant 0 : index
    %c0_9 = arith.constant 0 : index
    %7 = vector.load %arg5[%c0_8, %c0_9] : memref<1x32xf32, #tpu.memory_space<vmem>>, vector<1x32xf32>
    %8 = vector.broadcast %7 : vector<1x32xf32> to vector<8x32xf32>
    %9 = arith.addf %6, %8 : vector<8x32xf32>
    %cst_10 = arith.constant 5.000000e-02 : f32
    %10 = vector.broadcast %cst_10 : f32 to vector<8x32xf32>
    %11 = arith.mulf %10, %9 : vector<8x32xf32>
    %12 = arith.maximumf %9, %11 : vector<8x32xf32>
    %c0_11 = arith.constant 0 : index
    %c0_12 = arith.constant 0 : index
    %13 = vector.load %arg6[%c0_11, %c0_12] : memref<32x32xf32, #tpu.memory_space<vmem>>, vector<32x32xf32>
    %c0_13 = arith.constant 0 : index
    %c0_14 = arith.constant 0 : index
    %14 = vector.load %arg7[%c0_13, %c0_14] : memref<1x32xf32, #tpu.memory_space<vmem>>, vector<1x32xf32>
    %cst_15 = arith.constant dense<0.000000e+00> : vector<8x32xf32>
    %15 = tpu.matmul %12, %13, %cst_15 {dimension_numbers = #tpu.dot_dimension_numbers<[1], [0], [0], [1], [0, 0, 1, 1], [], []>} : vector<8x32xf32>, vector<32x32xf32>, vector<8x32xf32> -> vector<8x32xf32>
    %16 = vector.broadcast %14 : vector<1x32xf32> to vector<8x32xf32>
    %17 = arith.addf %15, %16 : vector<8x32xf32>
    %cst_16 = arith.constant 5.000000e-02 : f32
    %18 = vector.broadcast %cst_16 : f32 to vector<8x32xf32>
    %19 = arith.mulf %18, %17 : vector<8x32xf32>
    %20 = arith.maximumf %17, %19 : vector<8x32xf32>
    %c0_17 = arith.constant 0 : index
    %c0_18 = arith.constant 0 : index
    %21 = vector.load %arg8[%c0_17, %c0_18] : memref<1x32xf32, #tpu.memory_space<vmem>>, vector<1x32xf32>
    %c0_19 = arith.constant 0 : index
    %c0_20 = arith.constant 0 : index
    %22 = vector.load %arg9[%c0_19, %c0_20] : memref<1x1xf32, #tpu.memory_space<vmem>>, vector<1x1xf32>
    %23 = vector.broadcast %21 : vector<1x32xf32> to vector<8x32xf32>
    %24 = arith.mulf %20, %23 : vector<8x32xf32>
    %cst_21 = arith.constant dense<0.000000e+00> : vector<8xf32>
    %25 = vector.multi_reduction <add>, %24, %cst_21 [1] : vector<8x32xf32> to vector<8xf32>
    %26 = vector.shape_cast %25 : vector<8xf32> to vector<1x8xf32>
    %27 = vector.broadcast %22 : vector<1x1xf32> to vector<1x8xf32>
    %28 = arith.addf %26, %27 : vector<1x8xf32>
    %c0_22 = arith.constant 0 : index
    %c0_23 = arith.constant 0 : index
    %29 = vector.load %arg10[%c0_22, %c0_23] : memref<1x8xf32, #tpu.memory_space<vmem>>, vector<1x8xf32>
    tpu.vector_store %arg10[%c0_22, %c0_23], %28 {strides = array<i32>} : memref<1x8xf32, #tpu.memory_space<vmem>>, vector<1x8xf32>,
    return
  }
  func.func @transform_0(%arg0: i32) -> (i32, i32) {
    %c0_i32 = arith.constant 0 : i32
    %c0_i32_0 = arith.constant 0 : i32
    return %arg0, %c0_i32 : i32, i32
  }
  func.func @transform_1(%arg0: i32) -> (i32, i32) {
    %c0_i32 = arith.constant 0 : i32
    %c0_i32_0 = arith.constant 0 : i32
    return %arg0, %c0_i32 : i32, i32
  }
  func.func @transform_2(%arg0: i32) -> (i32, i32) {
    %c0_i32 = arith.constant 0 : i32
    %c0_i32_0 = arith.constant 0 : i32
    %c0_i32_1 = arith.constant 0 : i32
    return %c0_i32, %c0_i32_0 : i32, i32
  }
  func.func @transform_3(%arg0: i32) -> (i32, i32) {
    %c0_i32 = arith.constant 0 : i32
    %c0_i32_0 = arith.constant 0 : i32
    %c0_i32_1 = arith.constant 0 : i32
    return %c0_i32, %c0_i32_0 : i32, i32
  }
  func.func @transform_4(%arg0: i32) -> (i32, i32) {
    %c0_i32 = arith.constant 0 : i32
    %c0_i32_0 = arith.constant 0 : i32
    %c0_i32_1 = arith.constant 0 : i32
    return %c0_i32, %c0_i32_0 : i32, i32
  }
  func.func @transform_5(%arg0: i32) -> (i32, i32) {
    %c0_i32 = arith.constant 0 : i32
    %c0_i32_0 = arith.constant 0 : i32
    %c0_i32_1 = arith.constant 0 : i32
    return %c0_i32, %c0_i32_0 : i32, i32
  }
  func.func @transform_6(%arg0: i32) -> (i32, i32) {
    %c0_i32 = arith.constant 0 : i32
    %c0_i32_0 = arith.constant 0 : i32
    %c0_i32_1 = arith.constant 0 : i32
    return %c0_i32, %c0_i32_0 : i32, i32
  }
  func.func @transform_7(%arg0: i32) -> (i32, i32) {
    %c0_i32 = arith.constant 0 : i32
    %c0_i32_0 = arith.constant 0 : i32
    %c0_i32_1 = arith.constant 0 : i32
    return %c0_i32, %c0_i32_0 : i32, i32
  }
  func.func @transform_8(%arg0: i32) -> (i32, i32) {
    %c0_i32 = arith.constant 0 : i32
    %c0_i32_0 = arith.constant 0 : i32
    %c0_i32_1 = arith.constant 0 : i32
    return %c0_i32, %c0_i32_0 : i32, i32
  }
  func.func @transform_9(%arg0: i32) -> (i32, i32) {
    %c0_i32 = arith.constant 0 : i32
    %c0_i32_0 = arith.constant 0 : i32
    return %arg0, %c0_i32 : i32, i32
  }
}

</mosaic_0001>

<bundles_post_ra>
// kernel: tpu_custom_call.1
= control target key start
LH: loop header
LB: loop body
LE: loop exit
PB: predicated region body
PF: predicated region fallthrough
CT: control target
= control target key end

     0   :  { %s666_s0 = inlined_call_operand.hbm [shape: f32[8,16], index: 0, kind: input, shape index: {}]   ;;  %s667_s1 = inlined_call_operand.hbm [shape: f32[8,8], index: 1, kind: input, shape index: {}]   ;;  %s668_s2 = inlined_call_operand.hbm [shape: f32[16,32], index: 2, kind: input, shape index: {}]   ;;  %s669_s3 = inlined_call_operand.hbm [shape: f32[8,32], index: 3, kind: input, shape index: {}]   ;;  %s670_s4 = inlined_call_operand.vmem [shape: f32[1,32], index: 4, kind: input, shape index: {}]   ;;  %s671_s5 = inlined_call_operand.hbm [shape: f32[32,32], index: 5, kind: input, shape index: {}]   ;;  %s672_s6 = inlined_call_operand.vmem [shape: f32[1,32], index: 6, kind: input, shape index: {}]   ;;  %s673_s7 = inlined_call_operand.vmem [shape: f32[1,32], index: 7, kind: input, shape index: {}]   ;;  %s674_s8 = inlined_call_operand.<no memory space> [shape: f32[1,1], index: 8, kind: input, shape index: {}]   ;;  %s675_s9 = inlined_call_operand.hbm [shape: f32[1,8], index: 9, kind: output, shape index: {}]  }
   0x1   :  { %v14_v0 = vstv %s674_s8 }
   0x2   :  { %15 = vst [vmem:[#allocation2] sm:$0x1] %v14_v0 }
   0x3   :  { %16 = vsyncpa [#allocation4], 0 }
   0x4   :  { %17 = vsyncpa [#allocation7], 0 }
   0x5   :  { %18 = vsyncpa [#allocation10], 0 }
   0x6   :  { %19 = vsyncpa [#allocation5], 0  ;;  %s575_s11 = smov [#allocation6]   ;;  %s576_s13 = smov [#allocation9]  }
   0x7   :  { %s36_s12 = sshll.u32 %s575_s11, 4  ;;  %s58_s14 = sshll.u32 %s576_s13, 4  ;;  %s37_s12 = int_to_ptr.vmem [resolvable:$true] %s36_s12  ;;  %s59_s14 = int_to_ptr.vmem [resolvable:$true] %s58_s14 }
   0x8   :  { %s455_s15 = scalar_lea.vmem %s37_s12, 128  ;;  %p460_p1 = scmp.lt.s32.totalorder %s37_s12, %s37_s12 }
   0x9   :  { %p456_p0 = scmp.ne.s32.totalorder %s37_s12, %s455_s15  ;;  %p461_p2 = scmp.lt.s32.totalorder %s455_s15, %s455_s15 }
   0xb   :  { %p462_p3 = por %p461_p2, %p460_p1 }
   0xd   :  { %p463_p4 = pnand %p462_p3, %p456_p0 }
   0xf   :  { %466 = shalt.err (!%p463_p4)
}
  0x10   :  { %39 = dma.hbm_to_vmem [thread:$0]  %s667_s1, 128, %s37_s12, [#allocation7]  }
  0x11   :  { %s475_s17 = scalar_lea.vmem %s59_s14, 128  ;;  %p480_p6 = scmp.lt.s32.totalorder %s59_s14, %s59_s14 }
  0x12   :  { %p476_p5 = scmp.ne.s32.totalorder %s59_s14, %s475_s17  ;;  %p481_p7 = scmp.lt.s32.totalorder %s475_s17, %s475_s17 }
  0x14   :  { %p482_p8 = por %p481_p7, %p480_p6 }
  0x16   :  { %p483_p9 = pnand %p482_p8, %p476_p5 }
  0x18   :  { %486 = shalt.err (!%p483_p9)
}
  0x19   :  { %61 = dma.hbm_to_vmem [thread:$0]  %s669_s3, 128, %s59_s14, [#allocation10]  }
  0x1a   :  { %s577_s20 = smov [#allocation3]   ;;  %s578_s22 = smov [#allocation8]  }
  0x1b   :  { %s26_s21 = sshll.u32 %s577_s20, 4  ;;  %s45_s23 = sshll.u32 %s578_s22, 4  ;;  %s27_s21 = int_to_ptr.vmem [resolvable:$true] %s26_s21  ;;  %s46_s23 = int_to_ptr.vmem [resolvable:$true] %s45_s23 }
  0x1c   :  { %s495_s24 = scalar_lea.vmem %s27_s21, 128  ;;  %p500_p11 = scmp.lt.s32.totalorder %s27_s21, %s27_s21 }
  0x1d   :  { %p496_p10 = scmp.ne.s32.totalorder %s27_s21, %s495_s24  ;;  %p501_p12 = scmp.lt.s32.totalorder %s495_s24, %s495_s24 }
  0x1f   :  { %p502_p13 = por %p501_p12, %p500_p11 }
  0x21   :  { %p503_p0 = pnand %p502_p13, %p496_p10 }
  0x23   :  { %506 = shalt.err (!%p503_p0)
}
  0x24   :  { %29 = dma.hbm_to_vmem [thread:$0]  %s666_s0, 128, %s27_s21, [#allocation4]  }
  0x25   :  { %s515_s26 = scalar_lea.vmem %s46_s23, 256  ;;  %p520_p2 = scmp.lt.s32.totalorder %s46_s23, %s46_s23 }
  0x26   :  { %p516_p1 = scmp.ne.s32.totalorder %s46_s23, %s515_s26  ;;  %p521_p3 = scmp.lt.s32.totalorder %s515_s26, %s515_s26 }
  0x28   :  { %p522_p4 = por %p521_p3, %p520_p2 }
  0x2a   :  { %p523_p5 = pnand %p522_p4, %p516_p1 }
  0x2c   :  { %526 = shalt.err (!%p523_p5)
}
  0x2d   :  { %s579_s3 = smov 128   ;;  %s580_s27 = smov 8  }
  0x2e   :  { %51 = dma.hbm_to_vmem [thread:$0]  %s668_s2, 256, %s46_s23, [#allocation7], %s579_s3, %s579_s3, %s580_s27  }
  0x2f   :  { %s581_s30 = smov [#allocation11]  }
  0x30   :  { %s69_s10 = sshll.u32 %s581_s30, 4  ;;  %s70_s10 = int_to_ptr.vmem [resolvable:$true] %s69_s10 }
  0x31   :  { %s535_s11 = scalar_lea.vmem %s70_s10, 512  ;;  %p540_p7 = scmp.lt.s32.totalorder %s70_s10, %s70_s10 }
  0x32   :  { %p536_p6 = scmp.ne.s32.totalorder %s70_s10, %s535_s11  ;;  %p541_p8 = scmp.lt.s32.totalorder %s535_s11, %s535_s11 }
  0x34   :  { %p542_p9 = por %p541_p8, %p540_p7 }
  0x36   :  { %p543_p10 = pnand %p542_p9, %p536_p6 }
  0x38   :  { %546 = shalt.err (!%p543_p10)
}
  0x39   :  { %75 = dma.hbm_to_vmem [thread:$0]  %s671_s5, 512, %s70_s10, [#allocation10], %s579_s3, %s579_s3, %s580_s27  }
  0x3a   :  { %567 = dma.done.wait [#allocation4], 128  }
  0x3b   :  { %568 = vsyncadd [#allocation4], 4294967168 }
  0x3c   :  { %569 = dma.done.wait [#allocation7], 384  }
  0x3d   :  { %570 = vsyncadd [#allocation7], 4294966912 }
  0x3e   :  { %571 = dma.done.wait [#allocation10], 640  }
  0x3f   :  { %572 = vsyncadd [#allocation10], 4294966656  ;;  %v582_v1 = vmov 0.0   ;;  %vm583_vm0 = vmmov 0   ;;  %vm102_vm1 = vcmask 64512   ;;  %v101_v2 = vld [vmem:[#allocation9] sm:$0xff]  ;;  %v364_v31 = vlaneseq }
  0x40   :  { %412 = vmatprep.subr.mxu1 %v582_v1  ;;  %414 = vmatprep.mubr.msk.f32.mxu1 %vm583_vm0, %v582_v1  ;;  %v98_v3 = vld [vmem:[#allocation6] sm:$0xff]  ;;  %v100_v4 = vld [vmem:[#allocation8 + $0x8] sm:$0xff]  ;;  %v99_v5 = vld [vmem:[#allocation8] sm:$0xff]  ;;  %vm176_vm2 = vcmask 130048   ;;  %vm271_vm3 = vcmask 261120   ;;  %v584_v20 = vmov 0  }
  0x41   :  { %424 = vmatprep.subr.mxu0 %v582_v1  ;;  %432 = vmatprep.mubr.msk.f32.mxu0 %vm583_vm0, %v582_v1  ;;  %v97_v6 = vld [vmem:[#allocation3] sm:$0xff]  ;;  %v262_v8 = vld [vmem:[#allocation11 + $0x10] sm:$0xff]  ;;  %v261_v9 = vld [vmem:[#allocation11 + $0x8] sm:$0xff]  ;;  %v365_v32 = vshrl.u32 %v364_v31, 7  ;;  %v371_v35 = vand.u32 127, %v364_v31  ;;  %vm377_vm4 = vcmask 57344  }
  0x42   :  { %413 = vmatpush3.msra.mxu1 %v101_v2  ;;  %v263_v7 = vld [vmem:[#allocation11 + $0x18] sm:$0xff]  ;;  %v260_v10 = vld [vmem:[#allocation11] sm:$0xff]  ;;  %v398_v14 = vld [vmem:[%s670_s4] ss:$0 sm:$0xff]  ;;  %446 = vset.pattern.permute.xlu0 %v584_v20  ;;  %s585_s4 = smov [#allocation12]  }
  0x43   :  { %415 = vmatmul.mubr.msk.f32.vlgmr.msra.gmra.mxu1 %vm102_vm1, %v98_v3  ;;  %417 = vmatprep.subr.mxu1 %v582_v1  ;;  %v399_v21 = vld [vmem:[%s672_s6] ss:$0 sm:$0xff]  ;;  %v366_v34 = vsub.s32 0, %v365_v32  ;;  %v374_v37 = vsub.s32 %v371_v35, %v365_v32  ;;  %s385_s6 = sshll.u32 %s585_s4, 4  ;;  %s386_s6 = int_to_ptr.vmem [resolvable:$true] %s385_s6 }
  0x44   :  { %418 = vmatpush3.msra.mxu1 %v100_v4  ;;  %421 = vmatprep.mubr.msk.f32.mxu1 %vm583_vm0, %v582_v1  ;;  %v401_v26 = vld [vmem:[%s673_s7] ss:$0 sm:$0xff]  ;;  %s547_s7 = scalar_lea.vmem %s386_s6, 16  ;;  %s551_s8 = scalar_lea.vmem %s386_s6, 32 }
  0x45   :  { %419 = vmatprep.subr.mxu1 %v582_v1  ;;  %425 = vmatpush3.msra.mxu0 %v263_v7  ;;  %v348_v30 = vld [vmem:[#allocation2] sm:$0x1]  ;;  %p548_p11 = scmp.ne.s32.totalorder %s386_s6, %s547_s7  ;;  %p552_p12 = scmp.lt.s32.totalorder %s386_s6, %s386_s6 }
  0x46   :  { %420 = vmatpush3.msra.mxu1 %v99_v5  ;;  %426 = vmatprep.subr.mxu0 %v582_v1  ;;  %p553_p13 = scmp.lt.s32.totalorder %s551_s8, %s547_s7 }
  0x47   :  { %422 = vmatmul.mubr.msk.f32.vlgmr.msra.gmra.mxu1 %vm176_vm2, %v97_v6  ;;  %427 = vmatpush3.msra.mxu0 %v262_v8 }
  0x48   :  { %428 = vmatprep.subr.mxu0 %v582_v1  ;;  %p554_p0 = por %p553_p13, %p552_p12 }
  0x49   :  { %429 = vmatpush3.msra.mxu0 %v261_v9 }
  0x4a   :  { %430 = vmatprep.subr.mxu0 %v582_v1  ;;  %p555_p1 = pnand %p554_p0, %p548_p11 }
  0x4b   :  { %431 = vmatpush3.msra.mxu0 %v260_v10 }
 0x103   :  { %v172_v11 = vpop.f32.mrf.mxu1 }
 0x105   :  { %v416_v12 = vpop.f32.mrf.mxu1 }
 0x107   :  { %v246_v13 = vpop.f32.mrf.mxu1 }
 0x108   :  { %v247_v15 = vadd.f32 %v246_v13, %v172_v11 }
 0x109   :  { %v423_v16 = vpop.f32.mrf.mxu1 }
 0x10a   :  { %v257_v17 = vadd.f32 %v398_v14, %v247_v15 }
 0x10c   :  { %v258_v18 = vmul.f32 0.05, %v257_v17 }
 0x10e   :  { %v259_v19 = vmax.f32 %v257_v17, %v258_v18 }
 0x110   :  { %433 = vmatmul.mubr.msk.f32.vlgmr.msra.gmra.mxu0 %vm271_vm3, %v259_v19 }
 0x1d0   :  { %v341_v22 = vpop.f32.mrf.mxu0 }
 0x1d1   :  { %v342_v23 = vadd.f32 %v399_v21, %v341_v22 }
 0x1d2   :  { %v434_v24 = vpop.f32.mrf.mxu0 }
 0x1d3   :  { %v345_v25 = vmul.f32 0.05, %v342_v23 }
 0x1d5   :  { %v346_v27 = vmax.f32 %v342_v23, %v345_v25 }
 0x1d7   :  { %v355_v28 = vmul.f32 %v401_v26, %v346_v27 }
 0x1d9   :  { %v356_v29 = vsel %vm271_vm3, %v355_v28, 0.0 }
 0x1da   :  { %357 = vadd.xlane.f32.xlu0 %v356_v29 }
 0x1f0   :  { %361 = vperm.xlu0 %446, %v348_v30  }
 0x263   :  { %v358_v33 = vpop.xlane.xlu0 %357 }
 0x26b   :  { %v362_v36 = vpop.permute.xlu0 %361 }
 0x26c   :  { %v367_v38 = vrot.slane %v362_v36, %v366_v34 }
 0x26e   :  { %v368_v39 = vadd.f32 %v367_v38, %v358_v33 }
 0x270   :  { %v375_v40 = vrot.slane %v368_v39, %v374_v37 }
 0x272   :  { %378 = vst.msk [vmem:[#allocation12] sm:$0x1] %vm377_vm4, %v375_v40 }
 0x273   :  { %558 = shalt.err (!%p555_p1)
}
 0x274   :  { %388 = dma.vmem_to_hbm [thread:$0]  %s386_s6, 16, %s675_s9, [#allocation5]  }
 0x275   :  { %573 = dma.done.wait [#allocation5], 16  }
 0x276   :  { %574 = vsyncadd [#allocation5], 4294967280 }
 0x277   :  { %392 = vsyncpa [#allocation4], 1 }
 0x278   :  { %393 = vsyncpa [#allocation7], 1 }
 0x279   :  { %394 = vsyncpa [#allocation10], 1 }
 0x27a   :  { %395 = vsyncpa [#allocation5], 1 }

</bundles_post_ra>
